<compile_context>
chip_gen: v7x
topology: tpu7x:2x2x1
jax: 0.10.0
libtpu: 0.0.40
codegen_flags: <defaults>
</compile_context>

<pallas_src>
import functools

import jax
import jax.numpy as jnp
from jax.experimental import pallas as pl
from jax.experimental.pallas import tpu as pltpu


def _round_up(x, m):
    return (x + m - 1) // m * m


def _fpn_kernel(x_ref, w_ref, b_ref, pack_ref, out_ref):
    """One batch tile.

    Packed output lane layout (out_w = round_up(2N+2, 128) lanes):
      lane 0         : taus[:, 0]   (= 0)
      lanes 1..N     : taus[:, 1:]  (cumsum of probs)
      lanes N+1..2N  : tau_hats
      lane 2N+1      : entropy
      lanes > 2N+1   : zero padding
    """
    n = w_ref.shape[1]

    # x arrives f32; cast to bf16 just before the MXU (no extra HBM cast pass
    # in the wrapper).  MXU accumulates in f32.
    x = x_ref[...].astype(w_ref.dtype)                                  # (TB, E)
    logits = jnp.dot(x, w_ref[...],
                     preferred_element_type=jnp.float32) + b_ref[...]   # (TB, N)

    # Numerically stable softmax: one exp, one log, exact divide.
    m = jnp.max(logits, axis=1, keepdims=True)
    z = logits - m
    ez = jnp.exp(z)
    s = jnp.sum(ez, axis=1, keepdims=True)
    probs = ez / s                                                      # (TB, N)
    lse = jnp.log(s)                                                    # (TB, 1)
    # entropy = -sum(probs * log_probs) = lse - sum(probs * z)   (sum(probs)=1)
    ent = lse - jnp.sum(probs * z, axis=1, keepdims=True)               # (TB, 1)

    # Single widened pack matmul: produces taus[:,1:] and tau_hats already
    # lane-aligned inside a 128-lane slab (no concat / cross-lane shifts).
    slab = jnp.dot(probs, pack_ref[...],
                   preferred_element_type=jnp.float32)                  # (TB, OW)

    # Put entropy into lane 2N+1 via a lane-mask select (pure VPU, no XLU).
    lane = jax.lax.broadcasted_iota(jnp.int32, slab.shape, 1)
    out_ref[...] = slab + jnp.where(lane == 2 * n + 1, ent, 0.0)


def _build_pack(N, out_w):
    """(N, out_w) f32 constant:  slab = probs @ pack.

    Columns 1..N     : upper-triangular ones  -> taus[:, 1:]  (cumsum)
    Columns N+1..2N  : strict-upper ones + 0.5*I -> tau_hats
    Column 0, >2N    : zeros.
    """
    row = jax.lax.broadcasted_iota(jnp.int32, (N, out_w), 0)   # prob index i
    col = jax.lax.broadcasted_iota(jnp.int32, (N, out_w), 1)   # output lane
    taus_c = ((col >= 1) & (col <= N) & (row <= col - 1)).astype(jnp.float32)
    j = col - (N + 1)
    hat_c = jnp.where(
        (col >= N + 1) & (col <= 2 * N),
        jnp.where(row < j, 1.0, jnp.where(row == j, 0.5, 0.0)),
        0.0,
    )
    return taus_c + hat_c


def prepare_params(weight, bias, compute_dtype=jnp.bfloat16):
    """Hoisted one-time parameter prep (do NOT redo per forward call).

    weight: (N, E) PyTorch layout -> stored pre-transposed (E, N), bf16.
    bias:   (N,)                  -> (1, N) f32.
    """
    w_t = jnp.asarray(weight).T.astype(compute_dtype)          # (E, N)
    b2d = jnp.asarray(bias, dtype=jnp.float32).reshape(1, -1)  # (1, N)
    return w_t, b2d


@jax.jit
def fraction_proposal_forward_packed(x, w_t, b2d):
    """Returns the packed (B, out_w) f32 slab (layout in _fpn_kernel docstring).

    Consumers that can read the packed layout directly avoid the three
    wrapper slice copies of fraction_proposal_forward.
    """
    B, E = x.shape
    N = w_t.shape[1]
    out_w = _round_up(2 * N + 2, 128)

    # Batch tiling: a single full-batch tile up to 512 rows (legal: block dim
    # equals the full array dim), else 512-row tiles.  No explicit padding:
    # cdiv grid + Pallas OOB masking handle the ragged last block (garbage
    # rows stay confined -- no cross-row reductions -- and are never written).
    tile_b = B if B <= 512 else 512
    nb = pl.cdiv(B, tile_b)

    pack = _build_pack(N, out_w)   # tiny constant under jit

    cost = pl.CostEstimate(
        flops=2 * B * E * N + 2 * B * N * out_w + 8 * B * N,
        transcendentals=B * (N + 1),
        bytes_accessed=(
            x.size * x.dtype.itemsize
            + w_t.size * w_t.dtype.itemsize
            + b2d.size * 4
            + pack.size * 4
            + B * out_w * 4
        ),
    )

    return pl.pallas_call(
        _fpn_kernel,
        out_shape=jax.ShapeDtypeStruct((B, out_w), jnp.float32),
        grid=(nb,),
        in_specs=[
            pl.BlockSpec((tile_b, E), lambda i: (i, 0)),   # x tile (f32 in HBM)
            pl.BlockSpec((E, N), lambda i: (0, 0)),        # weight (resident)
            pl.BlockSpec((1, N), lambda i: (0, 0)),        # bias
            pl.BlockSpec((N, out_w), lambda i: (0, 0)),    # pack constant
        ],
        out_specs=pl.BlockSpec((tile_b, out_w), lambda i: (i, 0)),
        compiler_params=pltpu.CompilerParams(
            # TODO(synk): on v7x try pltpu.CORE_PARALLEL for the batch axis so
            # the second TensorCore is actually used when nb >= 2.
            dimension_semantics=("parallel",),
            vmem_limit_bytes=40 * 1024 * 1024,
        ),
        cost_estimate=cost,
    )(x, w_t, b2d, pack)


@jax.jit
def fraction_proposal_forward(x, w_t, b2d):
    """Module-compatible API: (taus, tau_hats, entropies).

    Note: the three slices of the packed slab are separate XLA copies; prefer
    fraction_proposal_forward_packed when the consumer can read the slab.
    """
    N = w_t.shape[1]
    slab = fraction_proposal_forward_packed(x, w_t, b2d)
    taus = slab[:, : N + 1]
    tau_hats = slab[:, N + 1 : 2 * N + 1]
    entropies = slab[:, 2 * N + 1 : 2 * N + 2]
    return taus, tau_hats, entropies


def _reference(x, weight, bias):
    """Pure-JAX f32 reference matching the PyTorch module."""
    logits = x @ weight.T + bias
    log_probs = jax.nn.log_softmax(logits, axis=1)
    probs = jnp.exp(log_probs)
    tau_0 = jnp.zeros((x.shape[0], 1), x.dtype)
    taus_1_N = jnp.cumsum(probs, axis=1)
    taus = jnp.concatenate([tau_0, taus_1_N], axis=1)
    tau_hats = (taus[:, :-1] + taus[:, 1:]) / 2.0
    entropies = -jnp.sum(log_probs * probs, axis=-1, keepdims=True)
    return taus, tau_hats, entropies


if __name__ == "__main__":
    # Small shapes consistent with the module (defaults: N=32, embedding_dim=
    # 7*7*64; reduced embedding_dim here for a compact example).
    B, E, N = 4, 128, 32

    key = jax.random.PRNGKey(0)
    k_x, k_w = jax.random.split(key)

    x = jax.random.normal(k_x, (B, E), dtype=jnp.float32)

    # Deterministic xavier_uniform init with gain=0.01 (bias = 0), matching
    # initialize_weights_xavier(m, gain=0.01).
    gain = 0.01
    bound = gain * jnp.sqrt(6.0 / (E + N))
    weight = jax.random.uniform(
        k_w, (N, E), dtype=jnp.float32, minval=-bound, maxval=bound
    )
    bias = jnp.zeros((N,), dtype=jnp.float32)

    # One-time parameter prep (pre-transpose + bf16 cast), hoisted out of the
    # per-call path as the module would keep it in its state.
    w_t, b2d = prepare_params(weight, bias)

    taus, tau_hats, ent = fraction_proposal_forward(x, w_t, b2d)
    jax.block_until_ready((taus, tau_hats, ent))

    # Sanity check against a pure-JAX f32 reference (bf16 compute on tiny
    # gain-0.01 logits keeps the error well below 1e-3).
    r_taus, r_tau_hats, r_ent = _reference(x, weight, bias)
    assert taus.shape == (B, N + 1)
    assert tau_hats.shape == (B, N)
    assert ent.shape == (B, 1)
    assert jnp.allclose(taus, r_taus, atol=1e-3), float(
        jnp.max(jnp.abs(taus - r_taus))
    )
    assert jnp.allclose(tau_hats, r_tau_hats, atol=1e-3), float(
        jnp.max(jnp.abs(tau_hats - r_tau_hats))
    )
    assert jnp.allclose(ent, r_ent, atol=1e-3), float(jnp.max(jnp.abs(ent - r_ent)))

    print("KERNEL_OK")
</pallas_src>

<mosaic_0001>
module attributes {stable_mosaic.version = 11 : i64} {
  func.func @_fpn_kernel(%arg0: i32, %arg1: memref<4x128xf32, #tpu.memory_space<vmem>>, %arg2: memref<128x32xbf16, #tpu.memory_space<vmem>>, %arg3: memref<1x32xf32, #tpu.memory_space<vmem>>, %arg4: memref<32x128xf32, #tpu.memory_space<vmem>>, %arg5: memref<4x128xf32, #tpu.memory_space<vmem>>) attributes {dimension_semantics = [#tpu.dimension_semantics<parallel>], iteration_bounds = array<i64: 1>, scalar_prefetch = 0 : i64, scratch_operands = 0 : i64, tpu.core_type = #tpu.core_type<tc>, window_params = [{transform_indices = @transform_0, window_bounds = array<i64: 4, 128>}, {pipeline_mode = #tpu.pipeline_mode<synchronous>, transform_indices = @transform_1, window_bounds = array<i64: 128, 32>}, {pipeline_mode = #tpu.pipeline_mode<synchronous>, transform_indices = @transform_2, window_bounds = array<i64: 1, 32>}, {pipeline_mode = #tpu.pipeline_mode<synchronous>, transform_indices = @transform_3, window_bounds = array<i64: 32, 128>}, {transform_indices = @transform_4, window_bounds = array<i64: 4, 128>}]} {
    %c0 = arith.constant 0 : index
    %c0_0 = arith.constant 0 : index
    %0 = vector.load %arg1[%c0, %c0_0] : memref<4x128xf32, #tpu.memory_space<vmem>>, vector<4x128xf32>
    %1 = arith.truncf %0 : vector<4x128xf32> to vector<4x128xbf16>
    %c0_1 = arith.constant 0 : index
    %c0_2 = arith.constant 0 : index
    %2 = vector.load %arg2[%c0_1, %c0_2] : memref<128x32xbf16, #tpu.memory_space<vmem>>, vector<128x32xbf16>
    %cst = arith.constant dense<0.000000e+00> : vector<4x32xf32>
    %3 = tpu.matmul %1, %2, %cst {dimension_numbers = #tpu.dot_dimension_numbers<[1], [0], [0], [1], [0, 0, 1, 1], [], []>} : vector<4x128xbf16>, vector<128x32xbf16>, vector<4x32xf32> -> vector<4x32xf32>
    %c0_3 = arith.constant 0 : index
    %c0_4 = arith.constant 0 : index
    %4 = vector.load %arg3[%c0_3, %c0_4] : memref<1x32xf32, #tpu.memory_space<vmem>>, vector<1x32xf32>
    %5 = vector.broadcast %4 : vector<1x32xf32> to vector<4x32xf32>
    %6 = arith.addf %3, %5 : vector<4x32xf32>
    %cst_5 = arith.constant dense<0xFF800000> : vector<4xf32>
    %7 = vector.multi_reduction <maximumf>, %6, %cst_5 [1] : vector<4x32xf32> to vector<4xf32>
    %8 = vector.shape_cast %7 : vector<4xf32> to vector<4x1xf32>
    %9 = vector.broadcast %8 : vector<4x1xf32> to vector<4x32xf32>
    %10 = arith.subf %6, %9 : vector<4x32xf32>
    %11 = math.exp %10 : vector<4x32xf32>
    %cst_6 = arith.constant dense<0.000000e+00> : vector<4xf32>
    %12 = vector.multi_reduction <add>, %11, %cst_6 [1] : vector<4x32xf32> to vector<4xf32>
    %13 = vector.shape_cast %12 : vector<4xf32> to vector<4x1xf32>
    %14 = vector.broadcast %13 : vector<4x1xf32> to vector<4x32xf32>
    %15 = arith.divf %11, %14 : vector<4x32xf32>
    %16 = math.log %13 : vector<4x1xf32>
    %17 = arith.mulf %15, %10 : vector<4x32xf32>
    %cst_7 = arith.constant dense<0.000000e+00> : vector<4xf32>
    %18 = vector.multi_reduction <add>, %17, %cst_7 [1] : vector<4x32xf32> to vector<4xf32>
    %19 = vector.shape_cast %18 : vector<4xf32> to vector<4x1xf32>
    %20 = arith.subf %16, %19 : vector<4x1xf32>
    %c0_8 = arith.constant 0 : index
    %c0_9 = arith.constant 0 : index
    %21 = vector.load %arg4[%c0_8, %c0_9] : memref<32x128xf32, #tpu.memory_space<vmem>>, vector<32x128xf32>
    %cst_10 = arith.constant dense<0.000000e+00> : vector<4x128xf32>
    %22 = tpu.matmul %15, %21, %cst_10 {dimension_numbers = #tpu.dot_dimension_numbers<[1], [0], [0], [1], [0, 0, 1, 1], [], []>} : vector<4x32xf32>, vector<32x128xf32>, vector<4x128xf32> -> vector<4x128xf32>
    %23 = tpu.iota {dimensions = array<i32: 1>} : vector<4x128xi32>
    %c65_i32 = arith.constant 65 : i32
    %24 = vector.broadcast %c65_i32 : i32 to vector<4x128xi32>
    %25 = arith.cmpi eq, %23, %24 : vector<4x128xi32>
    %cst_11 = arith.constant 0.000000e+00 : f32
    %26 = vector.shape_cast %20 : vector<4x1xf32> to vector<4x1xf32>
    %27 = vector.broadcast %26 : vector<4x1xf32> to vector<4x128xf32>
    %28 = vector.broadcast %cst_11 : f32 to vector<4x128xf32>
    %29 = arith.select %25, %27, %28 : vector<4x128xi1>, vector<4x128xf32>
    %30 = arith.addf %22, %29 : vector<4x128xf32>
    %c0_12 = arith.constant 0 : index
    %c0_13 = arith.constant 0 : index
    %31 = vector.load %arg5[%c0_12, %c0_13] : memref<4x128xf32, #tpu.memory_space<vmem>>, vector<4x128xf32>
    tpu.vector_store %arg5[%c0_12, %c0_13], %30 {strides = array<i32>} : memref<4x128xf32, #tpu.memory_space<vmem>>, vector<4x128xf32>,
    return
  }
  func.func @transform_0(%arg0: i32) -> (i32, i32) {
    %c0_i32 = arith.constant 0 : i32
    %c0_i32_0 = arith.constant 0 : i32
    return %arg0, %c0_i32 : i32, i32
  }
  func.func @transform_1(%arg0: i32) -> (i32, i32) {
    %c0_i32 = arith.constant 0 : i32
    %c0_i32_0 = arith.constant 0 : i32
    %c0_i32_1 = arith.constant 0 : i32
    return %c0_i32, %c0_i32_0 : i32, i32
  }
  func.func @transform_2(%arg0: i32) -> (i32, i32) {
    %c0_i32 = arith.constant 0 : i32
    %c0_i32_0 = arith.constant 0 : i32
    %c0_i32_1 = arith.constant 0 : i32
    return %c0_i32, %c0_i32_0 : i32, i32
  }
  func.func @transform_3(%arg0: i32) -> (i32, i32) {
    %c0_i32 = arith.constant 0 : i32
    %c0_i32_0 = arith.constant 0 : i32
    %c0_i32_1 = arith.constant 0 : i32
    return %c0_i32, %c0_i32_0 : i32, i32
  }
  func.func @transform_4(%arg0: i32) -> (i32, i32) {
    %c0_i32 = arith.constant 0 : i32
    %c0_i32_0 = arith.constant 0 : i32
    return %arg0, %c0_i32 : i32, i32
  }
}

</mosaic_0001>

<bundles_post_ra>
// kernel: fraction_proposal_forward_packed.1
= control target key start
LH: loop header
LB: loop body
LE: loop exit
PB: predicated region body
PF: predicated region fallthrough
CT: control target
= control target key end

     0   :  { %v351_v1 = vmov 0.0   ;;  %vm352_vm0 = vmmov 0   ;;  %s437_s0 = inlined_call_operand.vmem [shape: f32[4,128], index: 0, kind: input, shape index: {}]   ;;  %s438_s1 = inlined_call_operand.vmem [shape: bf16[128,32], index: 1, kind: input, shape index: {}]   ;;  %s439_s2 = inlined_call_operand.vmem [shape: f32[1,32], index: 2, kind: input, shape index: {}]   ;;  %s440_s3 = inlined_call_operand.vmem [shape: f32[32,128], index: 3, kind: input, shape index: {}]   ;;  %s441_s4 = inlined_call_operand.hbm [shape: f32[4,128], index: 4, kind: output, shape index: {}]  }
   0x1   :  { %v313_v0 = vld [vmem:[%s438_s1] sm:$0xff]   ;;  %272 = vmatprep.subr.bf16.mxu0 %v351_v1  ;;  %v314_v2 = vld [vmem:[%s438_s1 + $0x8] sm:$0xff]   ;;  %288 = vmatprep.mubr.msk.bf16.mxu0 %vm352_vm0, %v351_v1  ;;  %v315_v3 = vld [vmem:[%s438_s1 + $0x10] sm:$0xff]  }
   0x2   :  { %273 = vmatpush3.bf16.msra.mxu0 %v313_v0  ;;  %300 = vmatprep.mubr.msk.f32.mxu1 %vm352_vm0, %v351_v1 }
   0x3   :  { %274 = vmatprep.subr.bf16.mxu0 %v351_v1 }
   0x6   :  { %275 = vmatpush3.bf16.msra.mxu0 %v314_v2 }
   0x7   :  { %276 = vmatprep.subr.bf16.mxu0 %v351_v1 }
   0x8   :  { %9 = vsyncpa [#allocation3], 0  ;;  %v316_v4 = vld [vmem:[%s438_s1 + $0x18] sm:$0xff]   ;;  %v317_v5 = vld [vmem:[%s438_s1 + $0x20] sm:$0xff]   ;;  %vm132_vm1 = vcmask 257024   ;;  %v353_v26 = vmov 0.0|0.0   ;;  %v155_v35 = vlaneseq }
   0x9   :  { %v318_v6 = vld [vmem:[%s438_s1 + $0x28] sm:$0xff]   ;;  %v319_v7 = vld [vmem:[%s438_s1 + $0x30] sm:$0xff]   ;;  %v320_v8 = vld [vmem:[%s438_s1 + $0x38] sm:$0xff]   ;;  %303 = vmatprep.subr.bf16.mxu1 %v353_v26  ;;  %vm159_vm2 = vcmask 261120  }
   0xa   :  { %277 = vmatpush3.bf16.msra.mxu0 %v315_v3  ;;  %v19_v9 = vld [vmem:[%s437_s0] sm:$0xf]  ;;  %v152_v24 = vld [vmem:[%s440_s3 + $0x8] sm:$0xff]  ;;  %v153_v25 = vld [vmem:[%s440_s3 + $0x10] sm:$0xff]  ;;  %v156_v38 = vand.u32 127, %v155_v35 }
   0xb   :  { %278 = vmatprep.subr.bf16.mxu0 %v351_v1  ;;  %v20_v10 = vpack.c.bf16 %v19_v9, %v19_v9  ;;  %v248_v11 = vld [vmem:[%s439_s2] ss:$0 sm:$0xff]  ;;  %v154_v28 = vld [vmem:[%s440_s3 + $0x18] sm:$0xff] }
   0xc   :  { %v151_v23 = vld [vmem:[%s440_s3] sm:$0xff]  ;;  %v307_v29 = vpack.c.bf16 %v154_v28, %v153_v25  ;;  %vm157_vm3 = vcmp.eq.s32.totalorder %v156_v38, 65  ;;  %s354_s3 = smov [#allocation2]  }
   0xd   :  { %v304_v27 = vpack.c.bf16 %v152_v24, %v151_v23  ;;  %s240_s14 = sshll.u32 %s354_s3, 4  ;;  %s241_s14 = int_to_ptr.vmem [resolvable:$true] %s240_s14 }
   0xe   :  { %279 = vmatpush3.bf16.msra.mxu0 %v316_v4  ;;  %s327_s15 = scalar_lea.vmem %s241_s14, 64  ;;  %p332_p1 = scmp.lt.s32.totalorder %s241_s14, %s241_s14 }
   0xf   :  { %280 = vmatprep.subr.bf16.mxu0 %v351_v1  ;;  %305 = vmatpush3.bf16.msra.mxu1 %v304_v27  ;;  %p328_p0 = scmp.ne.s32.totalorder %s241_s14, %s327_s15  ;;  %p333_p2 = scmp.lt.s32.totalorder %s327_s15, %s327_s15 }
  0x10   :  { %306 = vmatprep.subr.bf16.mxu1 %v353_v26 }
  0x11   :  { %p334_p3 = por %p333_p2, %p332_p1 }
  0x12   :  { %281 = vmatpush3.bf16.msra.mxu0 %v317_v5 }
  0x13   :  { %282 = vmatprep.subr.bf16.mxu0 %v351_v1  ;;  %308 = vmatpush3.bf16.msra.mxu1 %v307_v29  ;;  %p335_p4 = pnand %p334_p3, %p328_p0 }
  0x16   :  { %283 = vmatpush3.bf16.msra.mxu0 %v318_v6 }
  0x17   :  { %284 = vmatprep.subr.bf16.mxu0 %v351_v1 }
  0x1a   :  { %285 = vmatpush3.bf16.msra.mxu0 %v319_v7 }
  0x1b   :  { %286 = vmatprep.subr.bf16.mxu0 %v351_v1 }
  0x1e   :  { %287 = vmatpush3.bf16.msra.mxu0 %v320_v8 }
  0x21   :  { %289 = vmatmul.mubr.bf16.vlgmr.msra.gmra.mrb[0].mxu0 %v20_v10 }
  0xf4   :  { %v126_v12 = vpop.f32.mrb[0].mxu0 }
  0xf5   :  { %v127_v13 = vadd.f32 %v248_v11, %v126_v12  ;;  %v290_v14 = vpop.f32.mrb[1].mxu0 }
  0xf6   :  { %v129_v15 = vpop.f32.mrb[2].mxu0 }
  0xf7   :  { %v291_v16 = vpop.f32.mrb[3].mxu0  ;;  %v133_v17 = vsel %vm132_vm1, %v127_v13, -inf }
  0xf8   :  { %134 = vmax.xlane.f32.xlu0 %v133_v17 }
 0x185   :  { %v135_v18 = vpop.xlane.xlu0 %134 }
 0x186   :  { %v136_v19 = vsub.f32 %v127_v13, %v135_v18 }
 0x188   :  { %v137_v20 = vmul.f32 1.442695, %v136_v19 }
 0x18a   :  { %321 = vpow2.f32 %v137_v20 }
 0x194   :  { %v322_v21 = vpop.eup %321 }
 0x195   :  { %v139_v22 = vsel %vm132_vm1, %v322_v21, 0.0 }
 0x196   :  { %140 = vadd.xlane.f32.xlu0 %v139_v22 }
 0x223   :  { %v141_v30 = vpop.xlane.xlu0 %140 }
 0x224   :  { %323 = vrcp.f32 %v141_v30 }
 0x225   :  { %325 = vlog2.f32 %v141_v30 }
 0x22e   :  { %v324_v31 = vpop.eup %323 }
 0x22f   :  { %v143_v32 = vmul.f32 %v324_v31, %v322_v21  ;;  %v326_v36 = vpop.eup %325 }
 0x230   :  { %v145_v39 = vmul.f32 0.6931472, %v326_v36 }
 0x231   :  { %301 = vmatmul.mubr.msk.f32.vlgmr.msra.gmra.mrb[0].mxu1 %vm159_vm2, %v143_v32  ;;  %v146_v33 = vmul.f32 %v143_v32, %v136_v19 }
 0x233   :  { %v147_v34 = vsel %vm132_vm1, %v146_v33, 0.0 }
 0x234   :  { %148 = vadd.xlane.f32.xlu1 %v147_v34 }
 0x2c1   :  { %v149_v37 = vpop.xlane.xlu1 %148 }
 0x2c2   :  { %v150_v40 = vsub.f32 %v145_v39, %v149_v37 }
 0x2c4   :  { %v158_v41 = vsel %vm157_vm3, %v150_v40, 0.0 }
 0x304   :  { %v229_v42 = vpop.f32.mrb[0].mxu1 }
 0x305   :  { %v230_v43 = vadd.f32 %v229_v42, %v158_v41  ;;  %v302_v44 = vpop.f32.mrb[1].mxu1 }
 0x307   :  { %233 = vst [vmem:[#allocation2] sm:$0xf] %v230_v43 }
 0x308   :  { %338 = shalt.err (!%p335_p4)
}
 0x309   :  { %s339_s18 = scalar_lea.hbm %s441_s4, 64 }
 0x30a   :  { %p340_p5 = scmp.ne.s32.totalorder %s441_s4, %s339_s18  ;;  %p343_p6 = scmp.lt.u32.totalorder %s339_s18, %s441_s4 }
 0x30c   :  { %p345_p7 = pnand %p343_p6, %p340_p5 }
 0x30e   :  { %348 = shalt.err (!%p345_p7)
}
 0x30f   :  { %243 = dma.vmem_to_hbm [thread:$0]  %s241_s14, 64, %s441_s4, [#allocation3]  }
 0x310   :  { %349 = dma.done.wait [#allocation3], 64  }
 0x311   :  { %350 = vsyncadd [#allocation3], 4294967232 }
 0x312   :  { %247 = vsyncpa [#allocation3], 1 }

</bundles_post_ra>
